<compile_context>
chip_gen: v5e
topology: v5e:2x2
jax: 0.10.0
libtpu: 0.0.40
codegen_flags: <defaults>
</compile_context>

<pallas_src>
import functools

import jax
import jax.numpy as jnp
from jax import lax
from jax.experimental import pallas as pl
from jax.experimental.pallas import tpu as pltpu


# ---------------------------------------------------------------------------
# helpers
# ---------------------------------------------------------------------------
def _act(x, act, beta=1.0):
    if act == "relu":
        return jnp.maximum(x, 0.0)
    if act == "softplus":
        z = beta * x  # stable softplus: max(z,0) + log1p(exp(-|z|))
        return (jnp.maximum(z, 0.0) + jnp.log1p(jnp.exp(-jnp.abs(z)))) / beta
    return jnp.tanh(x)  # 'tanh' default


def _mm(a, b):
    # high-precision reference matmul (keeps the correctness check meaningful)
    return jnp.matmul(a, b, precision=lax.Precision.HIGHEST)


def _round_up(n, m):
    return ((n + m - 1) // m) * m


def _device_kind():
    try:
        return jax.devices()[0].device_kind.lower()
    except Exception:
        return ""


def _default_compute_dtype():
    # bf16 point layers on v6e / v7x (accumulation stays f32); f32 elsewhere.
    kind = _device_kind()
    if "v6" in kind or "v7" in kind:
        return jnp.bfloat16
    return jnp.float32


def _default_target_rows():
    # v5e MXU M tile is 128; v6e/v7x prefer 256 rows per step.
    return 128 if "v5" in _device_kind() else 256


def _pick_block_b_p(batch, n_s, hidden_dim, *, target_rows=None,
                    max_rows=2048, min_steps=4):
    """Per-step batch TB for the P-Net.  TB divides `batch`, keeps the (TB, U)
    output block sublane-aligned (TB % 8 == 0 or TB == batch), caps the live
    (rows, H) activation footprint, and prefers >= min_steps grid steps
    (2 per v7x TensorCore) over hitting target_rows."""
    if target_rows is None:
        target_rows = _default_target_rows()
    row_cap = min(max_rows, max(8, (2 << 20) // max(4 * hidden_dim, 1)))
    cands = [t for t in range(1, batch + 1)
             if batch % t == 0 and (t % 8 == 0 or t == batch)
             and t * n_s <= row_cap]
    if not cands:
        # TODO(synk): tile N_s with an 'arbitrary' grid axis + running-max
        # VMEM accumulator for very large N_s*H (v7x: 64 MiB VMEM).
        return batch

    def choose(cs):
        hit = [t for t in cs if t * n_s >= target_rows]
        return min(hit) if hit else max(cs)

    good = [t for t in cands if batch // t >= min_steps]
    return choose(good) if good else choose(cands)


def _pick_block_b_u(batch, *, max_tb=16, min_steps=2):
    """Per-step batch TB for the U-Net: 8-16 samples per step, block-aligned."""
    cands = [t for t in range(1, batch + 1)
             if batch % t == 0 and (t % 8 == 0 or t == batch)]
    good = [t for t in cands if t <= max_tb and batch // t >= min_steps]
    if good:
        return max(good)
    small = [t for t in cands if t <= max_tb]
    return max(small) if small else batch


# ---------------------------------------------------------------------------
# P_Net kernel (point_p_net branch)
# ---------------------------------------------------------------------------
def p_net_kernel(*refs, num_layers, tb, n_s, act, compute_dtype):
    """One grid step processes `tb` function samples (tb * n_s points)."""
    it = iter(refs)
    xf_ref = next(it)        # (tb*n_s, d_in+1)  compute_dtype
    w_in_ref = next(it)      # (d_in+1, H)       compute_dtype
    b_in_ref = next(it)      # (1, H)            f32
    if num_layers > 0:
        w_hid_ref = next(it)   # (L, H, H)       compute_dtype
        b_hid_ref = next(it)   # (L, 1, H)       f32
    w_ap_ref = next(it)      # (H, H)
    b_ap_ref = next(it)      # (1, H)
    w_out_ref = next(it)     # (H, U_pad)
    b_out_ref = next(it)     # (1, U_pad)        f32
    o_ref = next(it)         # (tb, U_pad)       f32

    f32 = jnp.float32
    cd = compute_dtype

    # point_layer_in: f_s is folded into the matmul (xf = concat(x_s, f_s))
    h = _act(jnp.dot(xf_ref[...], w_in_ref[...], preferred_element_type=f32)
             + b_in_ref[...], act).astype(cd)                  # (tb*n_s, H)

    # hidden point layers: statically unrolled, static ref indices;
    # h stays in compute_dtype between layers (one cast per layer).
    for l in range(num_layers):
        h = _act(jnp.dot(h, w_hid_ref[l], preferred_element_type=f32)
                 + b_hid_ref[l], act).astype(cd)

    # max-pool over the n_s points of each of the tb samples
    hdim = h.shape[-1]
    if n_s % 8 == 0:
        pooled = jnp.max(h.reshape(tb, n_s, hdim), axis=1)     # (tb, H)
    else:
        # avoid a tile-crossing reshape: per-sample static-slice maxes instead
        pooled = jnp.stack(
            [jnp.max(h[t * n_s:(t + 1) * n_s], axis=0) for t in range(tb)])

    # point_layer_afterPooling + act, then point_layer_out (no act)
    h2 = _act(jnp.dot(pooled, w_ap_ref[...], preferred_element_type=f32)
              + b_ap_ref[...], act).astype(cd)
    o_ref[...] = (jnp.dot(h2, w_out_ref[...], preferred_element_type=f32)
                  + b_out_ref[...])


def p_net_forward(x_s, f_s, params, *, num_layers, act="tanh",
                  compute_dtype=None, block_b=None,
                  single_buffer_weights=True):
    """x_s: (B, N_s, d_in), f_s: (B, N_s, 1) -> theta: (B, U_pad) f32.

    U_pad = u_net_size rounded up to a multiple of 128 (zero-padded w_out /
    b_out columns) so the (tb, U) stores are lane-dense; the padding columns
    are never read downstream.
    """
    B, n_s, d_in = x_s.shape
    H = params["w_in"].shape[1]
    U = params["w_out"].shape[1]
    U_pad = _round_up(U, 128)

    cd = compute_dtype if compute_dtype is not None else _default_compute_dtype()
    f32 = jnp.float32

    tb = block_b if block_b is not None else _pick_block_b_p(B, n_s, H)
    assert B % tb == 0, "block_b must divide the batch"
    rows = tb * n_s

    # fold f into the first matmul: one (B*N_s, d_in+1) input stream
    xf = jnp.concatenate([x_s, f_s], axis=-1).reshape(B * n_s, d_in + 1).astype(cd)

    w_out, b_out = params["w_out"], params["b_out"]
    if U_pad != U:
        w_out = jnp.pad(w_out, ((0, 0), (0, U_pad - U)))
        b_out = jnp.pad(b_out, ((0, 0), (0, U_pad - U)))

    inputs = [xf, params["w_in"].astype(cd), params["b_in"].astype(f32)]
    if num_layers > 0:
        inputs += [params["w_hid"].astype(cd), params["b_hid"].astype(f32)]
    inputs += [params["w_ap"].astype(cd), params["b_ap"].astype(f32),
               w_out.astype(cd), b_out.astype(f32)]

    kernel = functools.partial(p_net_kernel, num_layers=num_layers, tb=tb,
                               n_s=n_s, act=act, compute_dtype=cd)

    # explicit VMEM budget: double-buffered blocks + constant weights + margin
    block_bytes = rows * (d_in + 1) * jnp.dtype(cd).itemsize + tb * U_pad * 4
    const_bytes = sum(int(a.size) * a.dtype.itemsize for a in inputs[1:])
    vmem_limit = int(min(64 << 20,
                         max(32 << 20,
                             4 * block_bytes + 2 * const_bytes + (4 << 20))))

    def build_and_run(single_buffer):
        def const_spec(arr):
            nd = arr.ndim
            idx = lambda b, _nd=nd: (0,) * _nd
            if single_buffer:
                # constant index_map -> never re-fetched; keep ONE VMEM buffer
                return pl.BlockSpec(arr.shape, idx, pipeline_mode=pl.Buffered(1))
            return pl.BlockSpec(arr.shape, idx)

        in_specs = [pl.BlockSpec((rows, d_in + 1), lambda b: (b, 0))]
        in_specs += [const_spec(a) for a in inputs[1:]]
        out_spec = pl.BlockSpec((tb, U_pad), lambda b: (b, 0))

        return pl.pallas_call(
            kernel,
            out_shape=jax.ShapeDtypeStruct((B, U_pad), jnp.float32),
            grid_spec=pltpu.PrefetchScalarGridSpec(
                num_scalar_prefetch=0,
                grid=(B // tb,),
                in_specs=in_specs,
                out_specs=out_spec),
            compiler_params=pltpu.CompilerParams(
                dimension_semantics=("parallel",),
                vmem_limit_bytes=vmem_limit),
        )(*inputs)

    if single_buffer_weights:
        try:
            return build_and_run(True)
        except (TypeError, ValueError, NotImplementedError,
                pltpu.LoweringException):
            # pipeline_mode=pl.Buffered(1) unsupported here -> default buffers
            pass
    return build_and_run(False)


# ---------------------------------------------------------------------------
# U_Net_functional kernel (per-sample MLP, weights = slices of theta)
# ---------------------------------------------------------------------------
def u_net_param_sizes(input_dim, hidden_list_u):
    sizes = [input_dim * hidden_list_u[0], hidden_list_u[0]]
    for i in range(len(hidden_list_u) - 1):
        sizes += [hidden_list_u[i] * hidden_list_u[i + 1], hidden_list_u[i + 1]]
    sizes += [hidden_list_u[-1], 1]
    cml, tot = [], 0
    for s in sizes:
        tot += s
        cml.append(tot)
    return sizes, cml


def u_net_kernel(*refs, tb, hidden_list_u, act, beta, vec_offsets):
    """One grid step evaluates the per-sample MLP for `tb` samples."""
    hl = list(hidden_list_u)
    num_hidden = len(hl) - 1
    it = iter(refs)
    x_ref = next(it)                                     # (tb, N_x, d_in) f32
    w0_ref = next(it)                                    # (tb, h0, d_in)  f32
    w_hid_refs = [next(it) for _ in range(num_hidden)]   # (tb, h_{i+1}, h_i)
    vecs_ref = next(it)                                  # (tb, V)         f32
    o_ref = next(it)                                     # (tb, N_x)       f32

    f32 = jnp.float32
    dn = (((1,), (1,)), ((), ()))   # x @ W^T : contract last dims, no transpose
    o_wl, o_b0, o_bh, o_bl = vec_offsets

    for s in range(tb):             # statically unrolled over the TB samples
        h = lax.dot_general(x_ref[s], w0_ref[s], dn, preferred_element_type=f32)
        h = _act(h + vecs_ref[s, o_b0[0]:o_b0[1]], act, beta)
        for i, w_ref in enumerate(w_hid_refs):
            h = lax.dot_general(h, w_ref[s], dn, preferred_element_type=f32)
            h = _act(h + vecs_ref[s, o_bh[i][0]:o_bh[i][1]], act, beta)
        w_last = vecs_ref[s, o_wl[0]:o_wl[1]]            # (h_last,)
        b_last = vecs_ref[s, o_bl[0]:o_bl[1]]            # (1,)
        # last layer as a lane reduction -> (N_x,) row, stored lane-major
        o_ref[s, :] = jnp.sum(h * w_last, axis=-1) + b_last


def u_net_forward(x, theta, *, hidden_list_u, act="tanh", beta=1.0,
                  block_b=None):
    """x: (B, N_x, input_dim), theta: (B, >=u_net_size) -> (B, N_x) f32."""
    B, n_x, d_in = x.shape
    hl = list(hidden_list_u)
    _, cml = u_net_param_sizes(d_in, hl)

    x = x.astype(jnp.float32)
    theta = theta.astype(jnp.float32)

    tb = block_b if block_b is not None else _pick_block_b_u(B)
    assert B % tb == 0, "U-Net block_b must divide the batch"

    # theta-derived per-sample weight matrices, kept in PyTorch (out, in)
    # layout -- NO transpose (the kernel contracts on the last dim).
    w0 = theta[:, :cml[0]].reshape(B, hl[0], d_in)
    w_hidden = [theta[:, cml[2 * i + 1]:cml[2 * i + 2]].reshape(B, hl[i + 1], hl[i])
                for i in range(len(hl) - 1)]

    # last-layer weight row + every bias packed into ONE lane-major array
    w_last = theta[:, cml[-3]:cml[-2]]                      # (B, hl[-1])
    b0 = theta[:, cml[0]:cml[1]]                            # (B, hl[0])
    b_hidden = [theta[:, cml[2 * i + 2]:cml[2 * i + 3]]     # (B, hl[i+1])
                for i in range(len(hl) - 1)]
    b_last = theta[:, cml[-2]:cml[-1]]                      # (B, 1)
    vecs = jnp.concatenate([w_last, b0] + b_hidden + [b_last], axis=1)

    # static lane offsets of the pieces inside `vecs`
    o_wl = (0, hl[-1])
    cur = hl[-1]
    o_b0 = (cur, cur + hl[0]); cur += hl[0]
    o_bh = []
    for i in range(len(hl) - 1):
        o_bh.append((cur, cur + hl[i + 1])); cur += hl[i + 1]
    o_bl = (cur, cur + 1); cur += 1
    V = cur

    inputs = [x, w0] + w_hidden + [vecs]
    kernel = functools.partial(
        u_net_kernel, tb=tb, hidden_list_u=tuple(hl), act=act, beta=beta,
        vec_offsets=(o_wl, o_b0, tuple(o_bh), o_bl))

    in_specs = [pl.BlockSpec((tb, n_x, d_in), lambda b: (b, 0, 0)),
                pl.BlockSpec((tb, hl[0], d_in), lambda b: (b, 0, 0))]
    for i in range(len(hl) - 1):
        in_specs.append(pl.BlockSpec((tb, hl[i + 1], hl[i]),
                                     lambda b: (b, 0, 0)))
    in_specs.append(pl.BlockSpec((tb, V), lambda b: (b, 0)))
    out_spec = pl.BlockSpec((tb, n_x), lambda b: (b, 0))

    per_step_elems = (tb * n_x * d_in + tb * hl[0] * d_in
                      + sum(tb * hl[i + 1] * hl[i] for i in range(len(hl) - 1))
                      + tb * V + tb * n_x)
    vmem_limit = int(min(64 << 20,
                         max(32 << 20, 16 * per_step_elems + (4 << 20))))

    return pl.pallas_call(
        kernel,
        out_shape=jax.ShapeDtypeStruct((B, n_x), jnp.float32),
        grid_spec=pltpu.PrefetchScalarGridSpec(
            num_scalar_prefetch=0,
            grid=(B // tb,),
            in_specs=in_specs,
            out_specs=out_spec),
        compiler_params=pltpu.CompilerParams(
            dimension_semantics=("parallel",),
            vmem_limit_bytes=vmem_limit),
    )(*inputs)


# ---------------------------------------------------------------------------
# S_Net_MFP forward (batch_f=True path)
# ---------------------------------------------------------------------------
def s_net_mfp_forward(x, x_s, f_s, p_params, *, num_layers, hidden_list_u,
                      act_p="tanh", act_u="tanh", tau_sp=1.0,
                      compute_dtype=None, block_b_p=None, block_b_u=None):
    # NOTE: the source module calls self.p_net(theta_f) with a single arg
    # (a bug upstream); interpreted as the P-Net consuming the (x_s, f_s)
    # observations of each function sample.
    theta = p_net_forward(x_s, f_s, p_params, num_layers=num_layers, act=act_p,
                          compute_dtype=compute_dtype, block_b=block_b_p)
    u = u_net_forward(x, theta, hidden_list_u=hidden_list_u, act=act_u,
                      beta=tau_sp, block_b=block_b_u)
    return u[..., None]          # (B, N_x, 1) to match the PyTorch module


# ---------------------------------------------------------------------------
# pure-JAX references (for verification)
# ---------------------------------------------------------------------------
def p_net_reference(x_s, f_s, params, *, num_layers, act="tanh"):
    xcat = jnp.concatenate([x_s, f_s], axis=-1).astype(jnp.float32)
    h = _act(_mm(xcat, params["w_in"]) + params["b_in"], act)
    for l in range(num_layers):
        h = _act(_mm(h, params["w_hid"][l]) + params["b_hid"][l], act)
    pooled = jnp.max(h, axis=1, keepdims=True)
    h2 = _act(_mm(pooled, params["w_ap"]) + params["b_ap"], act)
    return (_mm(h2, params["w_out"]) + params["b_out"])[:, 0, :]


def u_net_reference(x, theta, *, hidden_list_u, act="tanh", beta=1.0):
    B, _, d_in = x.shape
    hl = list(hidden_list_u)
    _, cml = u_net_param_sizes(d_in, hl)
    hi = lax.Precision.HIGHEST
    w0 = theta[:, :cml[0]].reshape(B, hl[0], d_in)
    b0 = theta[:, cml[0]:cml[1]].reshape(B, 1, hl[0])
    h = _act(jnp.einsum("bnd,bhd->bnh", x.astype(jnp.float32), w0,
                        precision=hi) + b0, act, beta)
    for i in range(len(hl) - 1):
        wi = theta[:, cml[2 * i + 1]:cml[2 * i + 2]].reshape(B, hl[i + 1], hl[i])
        bi = theta[:, cml[2 * i + 2]:cml[2 * i + 3]].reshape(B, 1, hl[i + 1])
        h = _act(jnp.einsum("bnh,bgh->bng", h, wi, precision=hi) + bi, act, beta)
    wl = theta[:, cml[-3]:cml[-2]].reshape(B, 1, hl[-1])
    bl = theta[:, cml[-2]:cml[-1]].reshape(B, 1, 1)
    return jnp.einsum("bnh,boh->bno", h, wl, precision=hi) + bl


def s_net_mfp_reference(x, x_s, f_s, p_params, *, num_layers, hidden_list_u,
                        act_p="tanh", act_u="tanh", tau_sp=1.0):
    theta = p_net_reference(x_s, f_s, p_params, num_layers=num_layers, act=act_p)
    return u_net_reference(x, theta, hidden_list_u=hidden_list_u,
                           act=act_u, beta=tau_sp)


# ---------------------------------------------------------------------------
# parameter init (P-Net weights stored pre-transposed: (in_ch, out_ch);
# w_in already includes the f-column, shape (input_dim + 1, H))
# ---------------------------------------------------------------------------
def init_p_net_params(key, *, input_dim, hidden_dim, num_layers, u_net_size):
    L = max(num_layers, 1)
    H = hidden_dim
    ks = jax.random.split(key, 8)
    s = 0.1
    return {
        "w_in":  s * jax.random.normal(ks[0], (input_dim + 1, H), jnp.float32),
        "b_in":  s * jax.random.normal(ks[1], (1, H), jnp.float32),
        "w_hid": s * jax.random.normal(ks[2], (L, H, H), jnp.float32),
        "b_hid": s * jax.random.normal(ks[3], (L, 1, H), jnp.float32),
        "w_ap":  s * jax.random.normal(ks[4], (H, H), jnp.float32),
        "b_ap":  s * jax.random.normal(ks[5], (1, H), jnp.float32),
        "w_out": s * jax.random.normal(ks[6], (H, u_net_size), jnp.float32),
        "b_out": s * jax.random.normal(ks[7], (1, u_net_size), jnp.float32),
    }


if __name__ == "__main__":
    # Small shapes consistent with the module (point_p_net=True, pooling='max',
    # act_p=act_u='tanh', batch_f=True).
    N_f = 64            # function samples; TB=16 -> 4 grid steps (2 per v7x TC)
    N_s = 8             # sensor points per sample (multiple of 8 sublanes)
    N_x = 16            # evaluation points per sample for the U-net
    input_dim = 4
    hidden_dim = 32     # production would use a multiple of 128; kept small
    num_layers = 2
    hidden_list_u = [32, 32]

    _, _cml = u_net_param_sizes(input_dim, hidden_list_u)
    u_net_size = int(_cml[-1])     # == U_Net_functional.get_num_params() = 1249

    key = jax.random.PRNGKey(0)
    k_xs, k_fs, k_x, k_p = jax.random.split(key, 4)
    x_s = jax.random.normal(k_xs, (N_f, N_s, input_dim), jnp.float32)
    f_s = jax.random.normal(k_fs, (N_f, N_s, 1), jnp.float32)
    x = jax.random.normal(k_x, (N_f, N_x, input_dim), jnp.float32)
    p_params = init_p_net_params(k_p, input_dim=input_dim,
                                 hidden_dim=hidden_dim,
                                 num_layers=num_layers,
                                 u_net_size=u_net_size)

    ref = s_net_mfp_reference(x, x_s, f_s, p_params, num_layers=num_layers,
                              hidden_list_u=hidden_list_u)

    # f32 path (safe on every generation, incl. v5e)
    out = s_net_mfp_forward(x, x_s, f_s, p_params, num_layers=num_layers,
                            hidden_list_u=hidden_list_u,
                            compute_dtype=jnp.float32)
    out = jax.block_until_ready(out)
    assert out.shape == (N_f, N_x, 1)
    assert jnp.allclose(out, ref, atol=1e-3, rtol=1e-3), \
        "f32 kernel mismatch vs JAX reference"

    # bf16 point-layer fast path (v6e/v7x default); biases, tanh and matmul
    # accumulation stay f32; x_s/f_s are also quantized to bf16 for the dots.
    out_bf16 = s_net_mfp_forward(x, x_s, f_s, p_params, num_layers=num_layers,
                                 hidden_list_u=hidden_list_u,
                                 compute_dtype=jnp.bfloat16)
    out_bf16 = jax.block_until_ready(out_bf16)
    assert out_bf16.shape == (N_f, N_x, 1)
    assert jnp.allclose(out_bf16, ref, atol=3e-2, rtol=3e-2), \
        "bf16 kernel mismatch vs JAX reference"

    print("KERNEL_OK")
</pallas_src>

<mosaic_0001>
module attributes {stable_mosaic.version = 11 : i64} {
  func.func @p_net_kernel(%arg0: i32, %arg1: memref<128x5xf32, #tpu.memory_space<vmem>>, %arg2: memref<5x32xf32, #tpu.memory_space<vmem>>, %arg3: memref<1x32xf32, #tpu.memory_space<vmem>>, %arg4: memref<2x32x32xf32, #tpu.memory_space<vmem>>, %arg5: memref<2x1x32xf32, #tpu.memory_space<vmem>>, %arg6: memref<32x32xf32, #tpu.memory_space<vmem>>, %arg7: memref<1x32xf32, #tpu.memory_space<vmem>>, %arg8: memref<32x1280xf32, #tpu.memory_space<vmem>>, %arg9: memref<1x1280xf32, #tpu.memory_space<vmem>>, %arg10: memref<16x1280xf32, #tpu.memory_space<vmem>>) attributes {dimension_semantics = [#tpu.dimension_semantics<parallel>], iteration_bounds = array<i64: 4>, scalar_prefetch = 0 : i64, scratch_operands = 0 : i64, tpu.core_type = #tpu.core_type<tc>, window_params = [{transform_indices = @transform_0, window_bounds = array<i64: 128, 5>}, {pipeline_mode = #tpu.pipeline_mode<synchronous>, transform_indices = @transform_1, window_bounds = array<i64: 5, 32>}, {pipeline_mode = #tpu.pipeline_mode<synchronous>, transform_indices = @transform_2, window_bounds = array<i64: 1, 32>}, {pipeline_mode = #tpu.pipeline_mode<synchronous>, transform_indices = @transform_3, window_bounds = array<i64: 2, 32, 32>}, {pipeline_mode = #tpu.pipeline_mode<synchronous>, transform_indices = @transform_4, window_bounds = array<i64: 2, 1, 32>}, {pipeline_mode = #tpu.pipeline_mode<synchronous>, transform_indices = @transform_5, window_bounds = array<i64: 32, 32>}, {pipeline_mode = #tpu.pipeline_mode<synchronous>, transform_indices = @transform_6, window_bounds = array<i64: 1, 32>}, {pipeline_mode = #tpu.pipeline_mode<synchronous>, transform_indices = @transform_7, window_bounds = array<i64: 32, 1280>}, {pipeline_mode = #tpu.pipeline_mode<synchronous>, transform_indices = @transform_8, window_bounds = array<i64: 1, 1280>}, {transform_indices = @transform_9, window_bounds = array<i64: 16, 1280>}]} {
    %c0 = arith.constant 0 : index
    %c0_0 = arith.constant 0 : index
    %0 = vector.load %arg1[%c0, %c0_0] : memref<128x5xf32, #tpu.memory_space<vmem>>, vector<128x5xf32>
    %c0_1 = arith.constant 0 : index
    %c0_2 = arith.constant 0 : index
    %1 = vector.load %arg2[%c0_1, %c0_2] : memref<5x32xf32, #tpu.memory_space<vmem>>, vector<5x32xf32>
    %cst = arith.constant dense<0.000000e+00> : vector<128x32xf32>
    %2 = tpu.matmul %0, %1, %cst {dimension_numbers = #tpu.dot_dimension_numbers<[1], [0], [0], [1], [0, 0, 1, 1], [], []>} : vector<128x5xf32>, vector<5x32xf32>, vector<128x32xf32> -> vector<128x32xf32>
    %c0_3 = arith.constant 0 : index
    %c0_4 = arith.constant 0 : index
    %3 = vector.load %arg3[%c0_3, %c0_4] : memref<1x32xf32, #tpu.memory_space<vmem>>, vector<1x32xf32>
    %4 = vector.broadcast %3 : vector<1x32xf32> to vector<128x32xf32>
    %5 = arith.addf %2, %4 : vector<128x32xf32>
    %6 = math.tanh %5 : vector<128x32xf32>
    %c0_5 = arith.constant 0 : index
    %c0_6 = arith.constant 0 : index
    %c0_7 = arith.constant 0 : index
    %7 = vector.load %arg4[%c0_5, %c0_6, %c0_7] : memref<2x32x32xf32, #tpu.memory_space<vmem>>, vector<1x32x32xf32>
    %8 = vector.shape_cast %7 : vector<1x32x32xf32> to vector<32x32xf32>
    %cst_8 = arith.constant dense<0.000000e+00> : vector<128x32xf32>
    %9 = tpu.matmul %6, %8, %cst_8 {dimension_numbers = #tpu.dot_dimension_numbers<[1], [0], [0], [1], [0, 0, 1, 1], [], []>} : vector<128x32xf32>, vector<32x32xf32>, vector<128x32xf32> -> vector<128x32xf32>
    %c0_9 = arith.constant 0 : index
    %c0_10 = arith.constant 0 : index
    %c0_11 = arith.constant 0 : index
    %10 = vector.load %arg5[%c0_9, %c0_10, %c0_11] : memref<2x1x32xf32, #tpu.memory_space<vmem>>, vector<1x1x32xf32>
    %11 = vector.shape_cast %10 : vector<1x1x32xf32> to vector<1x32xf32>
    %12 = vector.broadcast %11 : vector<1x32xf32> to vector<128x32xf32>
    %13 = arith.addf %9, %12 : vector<128x32xf32>
    %14 = math.tanh %13 : vector<128x32xf32>
    %c1 = arith.constant 1 : index
    %c0_12 = arith.constant 0 : index
    %c0_13 = arith.constant 0 : index
    %15 = vector.load %arg4[%c1, %c0_12, %c0_13] : memref<2x32x32xf32, #tpu.memory_space<vmem>>, vector<1x32x32xf32>
    %16 = vector.shape_cast %15 : vector<1x32x32xf32> to vector<32x32xf32>
    %cst_14 = arith.constant dense<0.000000e+00> : vector<128x32xf32>
    %17 = tpu.matmul %14, %16, %cst_14 {dimension_numbers = #tpu.dot_dimension_numbers<[1], [0], [0], [1], [0, 0, 1, 1], [], []>} : vector<128x32xf32>, vector<32x32xf32>, vector<128x32xf32> -> vector<128x32xf32>
    %c1_15 = arith.constant 1 : index
    %c0_16 = arith.constant 0 : index
    %c0_17 = arith.constant 0 : index
    %18 = vector.load %arg5[%c1_15, %c0_16, %c0_17] : memref<2x1x32xf32, #tpu.memory_space<vmem>>, vector<1x1x32xf32>
    %19 = vector.shape_cast %18 : vector<1x1x32xf32> to vector<1x32xf32>
    %20 = vector.broadcast %19 : vector<1x32xf32> to vector<128x32xf32>
    %21 = arith.addf %17, %20 : vector<128x32xf32>
    %22 = math.tanh %21 : vector<128x32xf32>
    %23 = vector.shape_cast %22 : vector<128x32xf32> to vector<16x8x32xf32>
    %cst_18 = arith.constant dense<0xFF800000> : vector<16x32xf32>
    %24 = vector.multi_reduction <maximumf>, %23, %cst_18 [1] : vector<16x8x32xf32> to vector<16x32xf32>
    %c0_19 = arith.constant 0 : index
    %c0_20 = arith.constant 0 : index
    %25 = vector.load %arg6[%c0_19, %c0_20] : memref<32x32xf32, #tpu.memory_space<vmem>>, vector<32x32xf32>
    %cst_21 = arith.constant dense<0.000000e+00> : vector<16x32xf32>
    %26 = tpu.matmul %24, %25, %cst_21 {dimension_numbers = #tpu.dot_dimension_numbers<[1], [0], [0], [1], [0, 0, 1, 1], [], []>} : vector<16x32xf32>, vector<32x32xf32>, vector<16x32xf32> -> vector<16x32xf32>
    %c0_22 = arith.constant 0 : index
    %c0_23 = arith.constant 0 : index
    %27 = vector.load %arg7[%c0_22, %c0_23] : memref<1x32xf32, #tpu.memory_space<vmem>>, vector<1x32xf32>
    %28 = vector.broadcast %27 : vector<1x32xf32> to vector<16x32xf32>
    %29 = arith.addf %26, %28 : vector<16x32xf32>
    %30 = math.tanh %29 : vector<16x32xf32>
    %c0_24 = arith.constant 0 : index
    %c0_25 = arith.constant 0 : index
    %31 = vector.load %arg8[%c0_24, %c0_25] : memref<32x1280xf32, #tpu.memory_space<vmem>>, vector<32x1280xf32>
    %cst_26 = arith.constant dense<0.000000e+00> : vector<16x1280xf32>
    %32 = tpu.matmul %30, %31, %cst_26 {dimension_numbers = #tpu.dot_dimension_numbers<[1], [0], [0], [1], [0, 0, 1, 1], [], []>} : vector<16x32xf32>, vector<32x1280xf32>, vector<16x1280xf32> -> vector<16x1280xf32>
    %c0_27 = arith.constant 0 : index
    %c0_28 = arith.constant 0 : index
    %33 = vector.load %arg9[%c0_27, %c0_28] : memref<1x1280xf32, #tpu.memory_space<vmem>>, vector<1x1280xf32>
    %34 = vector.broadcast %33 : vector<1x1280xf32> to vector<16x1280xf32>
    %35 = arith.addf %32, %34 : vector<16x1280xf32>
    %c0_29 = arith.constant 0 : index
    %c0_30 = arith.constant 0 : index
    %36 = vector.load %arg10[%c0_29, %c0_30] : memref<16x1280xf32, #tpu.memory_space<vmem>>, vector<16x1280xf32>
    tpu.vector_store %arg10[%c0_29, %c0_30], %35 {strides = array<i32>} : memref<16x1280xf32, #tpu.memory_space<vmem>>, vector<16x1280xf32>,
    return
  }
  func.func @transform_0(%arg0: i32) -> (i32, i32) {
    %c0_i32 = arith.constant 0 : i32
    %c0_i32_0 = arith.constant 0 : i32
    return %arg0, %c0_i32 : i32, i32
  }
  func.func @transform_1(%arg0: i32) -> (i32, i32) {
    %c0_i32 = arith.constant 0 : i32
    %c0_i32_0 = arith.constant 0 : i32
    %c0_i32_1 = arith.constant 0 : i32
    return %c0_i32, %c0_i32_0 : i32, i32
  }
  func.func @transform_2(%arg0: i32) -> (i32, i32) {
    %c0_i32 = arith.constant 0 : i32
    %c0_i32_0 = arith.constant 0 : i32
    %c0_i32_1 = arith.constant 0 : i32
    return %c0_i32, %c0_i32_0 : i32, i32
  }
  func.func @transform_3(%arg0: i32) -> (i32, i32, i32) {
    %c0_i32 = arith.constant 0 : i32
    %c0_i32_0 = arith.constant 0 : i32
    %c0_i32_1 = arith.constant 0 : i32
    %c0_i32_2 = arith.constant 0 : i32
    return %c0_i32, %c0_i32_0, %c0_i32_1 : i32, i32, i32
  }
  func.func @transform_4(%arg0: i32) -> (i32, i32, i32) {
    %c0_i32 = arith.constant 0 : i32
    %c0_i32_0 = arith.constant 0 : i32
    %c0_i32_1 = arith.constant 0 : i32
    %c0_i32_2 = arith.constant 0 : i32
    return %c0_i32, %c0_i32_0, %c0_i32_1 : i32, i32, i32
  }
  func.func @transform_5(%arg0: i32) -> (i32, i32) {
    %c0_i32 = arith.constant 0 : i32
    %c0_i32_0 = arith.constant 0 : i32
    %c0_i32_1 = arith.constant 0 : i32
    return %c0_i32, %c0_i32_0 : i32, i32
  }
  func.func @transform_6(%arg0: i32) -> (i32, i32) {
    %c0_i32 = arith.constant 0 : i32
    %c0_i32_0 = arith.constant 0 : i32
    %c0_i32_1 = arith.constant 0 : i32
    return %c0_i32, %c0_i32_0 : i32, i32
  }
  func.func @transform_7(%arg0: i32) -> (i32, i32) {
    %c0_i32 = arith.constant 0 : i32
    %c0_i32_0 = arith.constant 0 : i32
    %c0_i32_1 = arith.constant 0 : i32
    return %c0_i32, %c0_i32_0 : i32, i32
  }
  func.func @transform_8(%arg0: i32) -> (i32, i32) {
    %c0_i32 = arith.constant 0 : i32
    %c0_i32_0 = arith.constant 0 : i32
    %c0_i32_1 = arith.constant 0 : i32
    return %c0_i32, %c0_i32_0 : i32, i32
  }
  func.func @transform_9(%arg0: i32) -> (i32, i32) {
    %c0_i32 = arith.constant 0 : i32
    %c0_i32_0 = arith.constant 0 : i32
    return %arg0, %c0_i32 : i32, i32
  }
}

</mosaic_0001>

<bundles_post_ra>
// kernel: tpu_custom_call.1
= control target key start
LH: loop header
LB: loop body
LE: loop exit
PB: predicated region body
PF: predicated region fallthrough
CT: control target
= control target key end

     0   :  { %14 = vsyncpa [#allocation3], 0  ;;  %s2223_s0 = inlined_call_operand.vmem [shape: f32[512,5], index: 0, kind: input, shape index: {}]   ;;  %s2224_s1 = inlined_call_operand.vmem [shape: f32[5,32], index: 1, kind: input, shape index: {}]   ;;  %s2225_s2 = inlined_call_operand.vmem [shape: f32[1,32], index: 2, kind: input, shape index: {}]   ;;  %s2226_s3 = inlined_call_operand.vmem [shape: f32[2,32,32], index: 3, kind: input, shape index: {}]   ;;  %s2227_s4 = inlined_call_operand.vmem [shape: f32[2,1,32], index: 4, kind: input, shape index: {}]   ;;  %s2228_s5 = inlined_call_operand.vmem [shape: f32[32,32], index: 5, kind: input, shape index: {}]   ;;  %s2229_s6 = inlined_call_operand.vmem [shape: f32[1,32], index: 6, kind: input, shape index: {}]   ;;  %s2230_s7 = inlined_call_operand.vmem [shape: f32[32,1280], index: 7, kind: input, shape index: {}]   ;;  %s2231_s8 = inlined_call_operand.vmem [shape: f32[1,1280], index: 8, kind: input, shape index: {}]   ;;  %s2232_s9 = inlined_call_operand.hbm [shape: f32[64,1280], index: 9, kind: output, shape index: {}]  }
   0x1   :  { %16 = vsyncpa [#allocation3 + $0x1], 0  ;;  %s1705_s30 = smov 0   ;;  %s1707_s10 = smov 0  }
   0x2   :  { %s1709_s11 = smov 0   ;;  %s1711_s12 = smov 0  }
   0x3 LB: > { %s1726_s13 = sadd.s32 4294967295, %s1651_s12   ;;  %s1351_s14 = sadd.s32 4294967294, %s1651_s12   ;;  %s1651_s12 = sphi %s1711_s12, %s2238_s12   ;;  %s1647_s11 = sphi %s1709_s11, %s2237_s11   ;;  %s1643_s10 = sphi %s1707_s10, %s2236_s10   ;;  %s1639_s30 = sphi %s1705_s30, %s2235_s30  }
   0x4   : > { %s1730_s15 = sadd.s32 1, %s1651_s12   ;;  %s223_s16 = sadd.s32 1, %s1647_s11 }
   0x5   : > { %s220_s17 = ssub.s32 %s1651_s12, %s1730_s15  ;;  %p233_p0 = scmp.ne.s32.totalorder %s1647_s11, %s1643_s10 }
   0x6   : > { %p221_p1 = scmp.eq.s32.totalorder %s220_s17, 0  ;;  %p234_p2 = scmp.eq.s32.totalorder %s1726_s13, 3 }
   0x7   : > { %p239_p3 = scmp.ne.s32.totalorder %s1643_s10, %s1639_s30  ;;  %p240_p4 = scmp.eq.s32.totalorder %s1351_s14, 3 }
   0x8   : > { %s1741_s18 = scalar_select %p221_p1, %s1647_s11, %s223_s16  }
   0x9   : > { %p1743_p5 = por %p234_p2, %p233_p0  ;;  %p1747_p6 = por %p240_p4, %p239_p3 }
   0xa   : > { %p1354_p7 = scmp.ge.s32.totalorder %s1651_s12, 1  ;;  %p291_p8 = scmp.lt.s32.totalorder %s1651_s12, 5 }
   0xc   : > { %p292_p9 = pnand %p1354_p7, %p291_p8 }
   0xd   : > { %s1355_s23 = sshll.u32 (!%p292_p9), %s1726_s13, 4  ;;  %s1443_s28 = smul.u32 (!%p292_p9), 160, %s1726_s13 }
   0xe   : > { %295 = sbr.rel (%p292_p9) target bundleno = 951 (0x3b7), region = 56  ;;  %p328_p10 = scmp.lt.s32.totalorder (!%p292_p9), %s1355_s23, 63 }
   0xf   : > { %s1285_s16 = scalar_lea.hbm (!%p292_p9), %s2232_s9, %s1443_s28  ;;  %s1609_s28 = scalar_lea.hbm (!%p292_p9), %s2232_s9, 640 }
  0x13   : > { %v350_v0 = vld [vmem:[%s2224_s1] sm:$0x1f]  ;;  %vm404_vm0 = vcmask 1044480   ;;  %s2240_s23 = smov (!%p328_p10, %s1355_s23), 63  ;;  %vm355_vm1 = vcmask 39936   ;;  %v492_v14 = vld [vmem:[%s2226_s3 + $0x18] sm:$0xff] }
  0x14   : > { %1357 = vmatpush.msk.msra.mxu0 %vm404_vm0, %v350_v0  ;;  %s1356_s24 = sshll.u32 %s2240_s23, 3  ;;  %558 = vmatpush.msra.mxu1 %v492_v14  ;;  %v491_v15 = vld [vmem:[%s2226_s3 + $0x10] sm:$0xff]  ;;  %v490_v16 = vld [vmem:[%s2226_s3 + $0x8] sm:$0xff]  ;;  %v489_v18 = vld [vmem:[%s2226_s3] sm:$0xff]  ;;  %vm497_vm2 = vcmask 261120   ;;  %vm902_vm3 = vcmask 1041409  }
  0x15   : > { %s1760_s27 = scalar_lea.vmem %s2223_s0, %s1356_s24  ;;  %v1809_v21 = vld [vmem:[%s2225_s2] ss:$0 sm:$0xff]  ;;  %v1393_v63 = vld [vmem:[%s2226_s3 + $0x38] sm:$0xff]  ;;  %v1392_v0 = vld [vmem:[%s2226_s3 + $0x30] sm:$0xff]  ;;  %vm904_vm4 = vcmask 1042434   ;;  %vm906_vm5 = vcmask 1043459  }
  0x16   : > { %v334_v1 = vld [vmem:[%s1760_s27] sm:$0xff]  ;;  %v335_v2 = vld [vmem:[%s1760_s27 + $0x8] sm:$0xff]  ;;  %v336_v3 = vld [vmem:[%s1760_s27 + $0x10] sm:$0xff]  ;;  %559 = vmatpush.msra.mxu1 %v491_v15  ;;  %697 = vmatpush.msra.mxu2 %v1393_v63  ;;  %vm908_vm6 = vcmask 1044484   ;;  %vm910_vm7 = vcmask 1045509   ;;  %vm912_vm8 = vcmask 1046534  }
  0x17   : > { %1358 = vmatmul.msk.f32.vlgmr.msra.gmra.mxu0 %vm355_vm1, %v334_v1  ;;  %v337_v4 = vld [vmem:[%s1760_s27 + $0x18] sm:$0xff]  ;;  %v338_v5 = vld [vmem:[%s1760_s27 + $0x20] sm:$0xff]  ;;  %v339_v6 = vld [vmem:[%s1760_s27 + $0x28] sm:$0xff]  ;;  %vm914_vm9 = vcmask 1047559   ;;  %s324_s24 = sand.u32 1, %s1643_s10  }
  0x18   : > { %v340_v7 = vld [vmem:[%s1760_s27 + $0x30] sm:$0xff]  ;;  %v341_v8 = vld [vmem:[%s1760_s27 + $0x38] sm:$0xff]  ;;  %v342_v9 = vld [vmem:[%s1760_s27 + $0x40] sm:$0xff]  ;;  %560 = vmatpush.msra.mxu1 %v490_v16  ;;  %698 = vmatpush.msra.mxu2 %v1392_v0  ;;  %s1442_s21 = smul.u32 160, %s324_s24  ;;  %s1273_s22 = scalar_lea.sflag [#allocation3], %s324_s24 }
  0x19   : > { %v343_v10 = vld [vmem:[%s1760_s27 + $0x48] sm:$0xff]  ;;  %v344_v11 = vld [vmem:[%s1760_s27 + $0x50] sm:$0xff]  ;;  %v345_v12 = vld [vmem:[%s1760_s27 + $0x58] sm:$0xff] }
  0x1a   : > { %v346_v13 = vld [vmem:[%s1760_s27 + $0x60] sm:$0xff]  ;;  %v347_v17 = vld [vmem:[%s1760_s27 + $0x68] sm:$0xff]  ;;  %561 = vmatpush.msra.mxu1 %v489_v18  ;;  %v348_v19 = vld [vmem:[%s1760_s27 + $0x70] sm:$0xff] }
  0x1b   : > { %v349_v20 = vld [vmem:[%s1760_s27 + $0x78] sm:$0xff]  ;;  %v1391_v1 = vld [vmem:[%s2226_s3 + $0x28] sm:$0xff]  ;;  %v1895_v63 = vld [vmem:[%s2227_s4 + $0x1] ss:$0 sm:$0xff]  ;;  %s2141_s27 = scalar_lea.vmem [#allocation2], %s1442_s21  ;;  %s1288_s21 = sshll.u32 %s1285_s16, 4  ;;  %s1289_s21 = int_to_ptr.hbm [resolvable:$true] %s1288_s21 }
  0x1c   : > { %699 = vmatpush.msra.mxu2 %v1391_v1  ;;  %s1286_s17 = sshll.u32 %s2141_s27, 4  ;;  %s1603_s13 = sshra.s32 %s1289_s21, 4  ;;  %s1287_s17 = int_to_ptr.vmem [resolvable:$true] %s1286_s17  ;;  %s1604_s13 = int_to_ptr.hbm [resolvable:$true] %s1603_s13 }
  0x1d   : > { %s1605_s23 = scalar_lea.hbm %s1604_s13, 160  ;;  %p1610_p0 = scmp.lt.s32.totalorder %s1604_s13, %s2232_s9 }
  0x1e   : > { %p1606_p11 = scmp.ne.s32.totalorder %s1604_s13, %s1605_s23  ;;  %p1611_p1 = scmp.lt.s32.totalorder %s1609_s28, %s1605_s23 }
  0x1f   : > { %1359 = vmatmul.msk.f32.gmra.mxu0 %vm355_vm1, %v335_v2  ;;  %v1390_v2 = vld [vmem:[%s2226_s3 + $0x20] sm:$0xff] }
  0x20   : > { %700 = vmatpush.msra.mxu2 %v1390_v2  ;;  %p1607_p12 = pnand %p1606_p11, %p1743_p5  ;;  %p1612_p2 = por %p1611_p1, %p1610_p0 }
  0x22   : > { %p1608_p13 = pneg %p1607_p12 }
  0x24   : > { %p1613_p3 = pnand %p1612_p2, %p1608_p13 }
  0x27   : > { %1360 = vmatmul.msk.f32.gmra.mxu0 %vm355_vm1, %v336_v3 }
  0x2f   : > { %1361 = vmatmul.msk.f32.gmra.mxu0 %vm355_vm1, %v337_v4 }
  0x37   : > { %1362 = vmatmul.msk.f32.gmra.mxu0 %vm355_vm1, %v338_v5 }
  0x3f   : > { %1363 = vmatmul.msk.f32.gmra.mxu0 %vm355_vm1, %v339_v6 }
  0x47   : > { %1364 = vmatmul.msk.f32.gmra.mxu0 %vm355_vm1, %v340_v7 }
  0x4f   : > { %1365 = vmatmul.msk.f32.gmra.mxu0 %vm355_vm1, %v341_v8 }
  0x57   : > { %1366 = vmatmul.msk.f32.gmra.mxu0 %vm355_vm1, %v342_v9 }
  0x5f   : > { %1367 = vmatmul.msk.f32.gmra.mxu0 %vm355_vm1, %v343_v10  ;;  %v1858_v10 = vld [vmem:[%s2227_s4] ss:$0 sm:$0xff] }
  0x67   : > { %1368 = vmatmul.msk.f32.gmra.mxu0 %vm355_vm1, %v344_v11 }
  0x6f   : > { %1369 = vmatmul.msk.f32.gmra.mxu0 %vm355_vm1, %v345_v12 }
  0x77   : > { %1370 = vmatmul.msk.f32.gmra.mxu0 %vm355_vm1, %v346_v13 }
  0x7f   : > { %1371 = vmatmul.msk.f32.gmra.mxu0 %vm355_vm1, %v347_v17 }
  0x87   : > { %1372 = vmatmul.msk.f32.gmra.mxu0 %vm355_vm1, %v348_v19 }
  0x8f   : > { %1373 = vmatmul.msk.f32.gmra.mxu0 %vm355_vm1, %v349_v20 }
  0x94   : > { %v425_v22 = vpop.f32.mrf.mxu0 }
  0x95   : > { %v426_v23 = vadd.f32 %v1809_v21, %v425_v22 }
  0x97   : > { %1489 = vtanh.f32 %v426_v23 }
  0x9c   : > { %v428_v24 = vpop.f32.mrf.mxu0 }
  0x9d   : > { %v1490_v25 = vpop.eup %1489  ;;  %v429_v26 = vadd.f32 %v1809_v21, %v428_v24 }
  0x9e   : > { %1374 = vmatmul.msk.f32.vlgmr.msra.gmra.mxu1 %vm497_vm2, %v1490_v25 }
  0x9f   : > { %1491 = vtanh.f32 %v429_v26 }
  0xa4   : > { %v431_v27 = vpop.f32.mrf.mxu0 }
  0xa5   : > { %v1492_v28 = vpop.eup %1491  ;;  %v432_v29 = vadd.f32 %v1809_v21, %v431_v27 }
  0xa6   : > { %1375 = vmatmul.msk.f32.gmra.mxu1 %vm497_vm2, %v1492_v28 }
  0xa7   : > { %1493 = vtanh.f32 %v432_v29 }
  0xac   : > { %v434_v30 = vpop.f32.mrf.mxu0 }
  0xad   : > { %v1494_v31 = vpop.eup %1493  ;;  %v435_v32 = vadd.f32 %v1809_v21, %v434_v30 }
  0xae   : > { %1376 = vmatmul.msk.f32.gmra.mxu1 %vm497_vm2, %v1494_v31 }
  0xaf   : > { %1495 = vtanh.f32 %v435_v32 }
  0xb4   : > { %v437_v33 = vpop.f32.mrf.mxu0 }
  0xb5   : > { %v1496_v34 = vpop.eup %1495  ;;  %v438_v35 = vadd.f32 %v1809_v21, %v437_v33 }
  0xb6   : > { %1377 = vmatmul.msk.f32.gmra.mxu1 %vm497_vm2, %v1496_v34 }
  0xb7   : > { %1497 = vtanh.f32 %v438_v35 }
  0xbc   : > { %v440_v36 = vpop.f32.mrf.mxu0 }
  0xbd   : > { %v1498_v37 = vpop.eup %1497  ;;  %v441_v38 = vadd.f32 %v1809_v21, %v440_v36 }
  0xbe   : > { %1378 = vmatmul.msk.f32.gmra.mxu1 %vm497_vm2, %v1498_v37 }
  0xbf   : > { %1499 = vtanh.f32 %v441_v38 }
  0xc4   : > { %v443_v39 = vpop.f32.mrf.mxu0 }
  0xc5   : > { %v1500_v40 = vpop.eup %1499  ;;  %v444_v41 = vadd.f32 %v1809_v21, %v443_v39 }
  0xc6   : > { %1379 = vmatmul.msk.f32.gmra.mxu1 %vm497_vm2, %v1500_v40 }
  0xc7   : > { %1501 = vtanh.f32 %v444_v41 }
  0xcc   : > { %v446_v42 = vpop.f32.mrf.mxu0 }
  0xcd   : > { %v1502_v43 = vpop.eup %1501  ;;  %v447_v44 = vadd.f32 %v1809_v21, %v446_v42 }
  0xce   : > { %1380 = vmatmul.msk.f32.gmra.mxu1 %vm497_vm2, %v1502_v43 }
  0xcf   : > { %1503 = vtanh.f32 %v447_v44 }
  0xd4   : > { %v449_v45 = vpop.f32.mrf.mxu0 }
  0xd5   : > { %v1504_v46 = vpop.eup %1503  ;;  %v450_v47 = vadd.f32 %v1809_v21, %v449_v45 }
  0xd6   : > { %1381 = vmatmul.msk.f32.gmra.mxu1 %vm497_vm2, %v1504_v46 }
  0xd7   : > { %1505 = vtanh.f32 %v450_v47 }
  0xdc   : > { %v452_v48 = vpop.f32.mrf.mxu0 }
  0xdd   : > { %v1506_v49 = vpop.eup %1505  ;;  %v453_v50 = vadd.f32 %v1809_v21, %v452_v48 }
  0xde   : > { %1382 = vmatmul.msk.f32.gmra.mxu1 %vm497_vm2, %v1506_v49 }
  0xdf   : > { %1507 = vtanh.f32 %v453_v50 }
  0xe4   : > { %v455_v51 = vpop.f32.mrf.mxu0 }
  0xe5   : > { %v1508_v52 = vpop.eup %1507  ;;  %v456_v53 = vadd.f32 %v1809_v21, %v455_v51 }
  0xe6   : > { %1383 = vmatmul.msk.f32.gmra.mxu1 %vm497_vm2, %v1508_v52 }
  0xe7   : > { %1509 = vtanh.f32 %v456_v53 }
  0xec   : > { %v458_v54 = vpop.f32.mrf.mxu0 }
  0xed   : > { %v1510_v55 = vpop.eup %1509  ;;  %v459_v56 = vadd.f32 %v1809_v21, %v458_v54 }
  0xee   : > { %1384 = vmatmul.msk.f32.gmra.mxu1 %vm497_vm2, %v1510_v55 }
  0xef   : > { %1511 = vtanh.f32 %v459_v56 }
  0xf4   : > { %v461_v57 = vpop.f32.mrf.mxu0 }
  0xf5   : > { %v1512_v58 = vpop.eup %1511  ;;  %v462_v59 = vadd.f32 %v1809_v21, %v461_v57 }
  0xf6   : > { %1385 = vmatmul.msk.f32.gmra.mxu1 %vm497_vm2, %v1512_v58 }
  0xf7   : > { %1513 = vtanh.f32 %v462_v59 }
  0xfc   : > { %v464_v60 = vpop.f32.mrf.mxu0 }
  0xfd   : > { %v1514_v61 = vpop.eup %1513  ;;  %v465_v62 = vadd.f32 %v1809_v21, %v464_v60 }
  0xfe   : > { %1386 = vmatmul.msk.f32.gmra.mxu1 %vm497_vm2, %v1514_v61 }
  0xff   : > { %1515 = vtanh.f32 %v465_v62 }
 0x104   : > { %v467_v3 = vpop.f32.mrf.mxu0 }
 0x105   : > { %v1516_v4 = vpop.eup %1515  ;;  %v468_v5 = vadd.f32 %v1809_v21, %v467_v3 }
 0x106   : > { %1387 = vmatmul.msk.f32.gmra.mxu1 %vm497_vm2, %v1516_v4 }
 0x107   : > { %1517 = vtanh.f32 %v468_v5 }
 0x10c   : > { %v470_v6 = vpop.f32.mrf.mxu0 }
 0x10d   : > { %v1518_v7 = vpop.eup %1517  ;;  %v471_v8 = vadd.f32 %v1809_v21, %v470_v6 }
 0x10e   : > { %1388 = vmatmul.msk.f32.gmra.mxu1 %vm497_vm2, %v1518_v7  ;;  %v881_v7 = vld [vmem:[%s2228_s5 + $0x18] sm:$0xff] }
 0x10f   : > { %1519 = vtanh.f32 %v471_v8  ;;  %939 = vmatpush.msra.mxu3 %v881_v7 }
 0x115   : > { %v1520_v9 = vpop.eup %1519 }
 0x116   : > { %1389 = vmatmul.msk.f32.gmra.mxu1 %vm497_vm2, %v1520_v9 }
 0x11b   : > { %v563_v11 = vpop.f32.mrf.mxu1 }
 0x11c   : > { %v564_v12 = vadd.f32 %v1858_v10, %v563_v11 }
 0x11e   : > { %1521 = vtanh.f32 %v564_v12 }
 0x123   : > { %v566_v13 = vpop.f32.mrf.mxu1 }
 0x124   : > { %v1522_v14 = vpop.eup %1521  ;;  %v567_v15 = vadd.f32 %v1858_v10, %v566_v13  ;;  %v879_v13 = vld [vmem:[%s2228_s5 + $0x8] sm:$0xff] }
 0x125   : > { %1395 = vmatmul.msk.f32.vlgmr.msra.gmra.mxu2 %vm497_vm2, %v1522_v14 }
 0x126   : > { %1523 = vtanh.f32 %v567_v15 }
 0x12b   : > { %v569_v16 = vpop.f32.mrf.mxu1 }
 0x12c   : > { %v1524_v17 = vpop.eup %1523  ;;  %v570_v18 = vadd.f32 %v1858_v10, %v569_v16 }
 0x12d   : > { %1396 = vmatmul.msk.f32.gmra.mxu2 %vm497_vm2, %v1524_v17  ;;  %v878_v17 = vld [vmem:[%s2228_s5] sm:$0xff] }
 0x12e   : > { %1525 = vtanh.f32 %v570_v18 }
 0x133   : > { %v572_v19 = vpop.f32.mrf.mxu1 }
 0x134   : > { %v1526_v20 = vpop.eup %1525  ;;  %v573_v21 = vadd.f32 %v1858_v10, %v572_v19 }
 0x135   : > { %1397 = vmatmul.msk.f32.gmra.mxu2 %vm497_vm2, %v1526_v20 }
 0x136   : > { %1527 = vtanh.f32 %v573_v21 }
 0x13b   : > { %v575_v22 = vpop.f32.mrf.mxu1 }
 0x13c   : > { %v1528_v23 = vpop.eup %1527  ;;  %v576_v24 = vadd.f32 %v1858_v10, %v575_v22 }
 0x13d   : > { %1398 = vmatmul.msk.f32.gmra.mxu2 %vm497_vm2, %v1528_v23 }
 0x13e   : > { %1529 = vtanh.f32 %v576_v24 }
 0x143   : > { %v578_v25 = vpop.f32.mrf.mxu1 }
 0x144   : > { %v1530_v26 = vpop.eup %1529  ;;  %v579_v27 = vadd.f32 %v1858_v10, %v578_v25 }
 0x145   : > { %1399 = vmatmul.msk.f32.gmra.mxu2 %vm497_vm2, %v1530_v26 }
 0x146   : > { %1531 = vtanh.f32 %v579_v27 }
 0x14b   : > { %v581_v28 = vpop.f32.mrf.mxu1 }
 0x14c   : > { %v1532_v29 = vpop.eup %1531  ;;  %v582_v30 = vadd.f32 %v1858_v10, %v581_v28 }
 0x14d   : > { %1400 = vmatmul.msk.f32.gmra.mxu2 %vm497_vm2, %v1532_v29 }
 0x14e   : > { %1533 = vtanh.f32 %v582_v30 }
 0x153   : > { %v584_v31 = vpop.f32.mrf.mxu1 }
 0x154   : > { %v1534_v32 = vpop.eup %1533  ;;  %v585_v33 = vadd.f32 %v1858_v10, %v584_v31 }
 0x155   : > { %1401 = vmatmul.msk.f32.gmra.mxu2 %vm497_vm2, %v1534_v32 }
 0x156   : > { %1535 = vtanh.f32 %v585_v33 }
 0x15b   : > { %v587_v34 = vpop.f32.mrf.mxu1 }
 0x15c   : > { %v1536_v35 = vpop.eup %1535  ;;  %v588_v36 = vadd.f32 %v1858_v10, %v587_v34 }
 0x15d   : > { %1402 = vmatmul.msk.f32.gmra.mxu2 %vm497_vm2, %v1536_v35 }
 0x15e   : > { %1537 = vtanh.f32 %v588_v36 }
 0x163   : > { %v590_v37 = vpop.f32.mrf.mxu1 }
 0x164   : > { %v1538_v38 = vpop.eup %1537  ;;  %v591_v39 = vadd.f32 %v1858_v10, %v590_v37 }
 0x165   : > { %1403 = vmatmul.msk.f32.gmra.mxu2 %vm497_vm2, %v1538_v38 }
 0x166   : > { %1539 = vtanh.f32 %v591_v39 }
 0x16b   : > { %v593_v40 = vpop.f32.mrf.mxu1 }
 0x16c   : > { %v1540_v41 = vpop.eup %1539  ;;  %v594_v42 = vadd.f32 %v1858_v10, %v593_v40 }
 0x16d   : > { %1404 = vmatmul.msk.f32.gmra.mxu2 %vm497_vm2, %v1540_v41 }
 0x16e   : > { %1541 = vtanh.f32 %v594_v42 }
 0x173   : > { %v596_v43 = vpop.f32.mrf.mxu1 }
 0x174   : > { %v1542_v44 = vpop.eup %1541  ;;  %v597_v45 = vadd.f32 %v1858_v10, %v596_v43 }
 0x175   : > { %1405 = vmatmul.msk.f32.gmra.mxu2 %vm497_vm2, %v1542_v44 }
 0x176   : > { %1543 = vtanh.f32 %v597_v45 }
 0x17b   : > { %v599_v46 = vpop.f32.mrf.mxu1 }
 0x17c   : > { %v1544_v47 = vpop.eup %1543  ;;  %v600_v48 = vadd.f32 %v1858_v10, %v599_v46 }
 0x17d   : > { %1406 = vmatmul.msk.f32.gmra.mxu2 %vm497_vm2, %v1544_v47 }
 0x17e   : > { %1545 = vtanh.f32 %v600_v48 }
 0x183   : > { %v602_v49 = vpop.f32.mrf.mxu1 }
 0x184   : > { %v1546_v50 = vpop.eup %1545  ;;  %v603_v51 = vadd.f32 %v1858_v10, %v602_v49 }
 0x185   : > { %1407 = vmatmul.msk.f32.gmra.mxu2 %vm497_vm2, %v1546_v50 }
 0x186   : > { %1547 = vtanh.f32 %v603_v51 }
 0x18b   : > { %v605_v52 = vpop.f32.mrf.mxu1 }
 0x18c   : > { %v1548_v53 = vpop.eup %1547  ;;  %v606_v54 = vadd.f32 %v1858_v10, %v605_v52 }
 0x18d   : > { %1408 = vmatmul.msk.f32.gmra.mxu2 %vm497_vm2, %v1548_v53 }
 0x18e   : > { %1549 = vtanh.f32 %v606_v54 }
 0x193   : > { %v608_v55 = vpop.f32.mrf.mxu1 }
 0x194   : > { %v1550_v56 = vpop.eup %1549  ;;  %v609_v57 = vadd.f32 %v1858_v10, %v608_v55  ;;  %v880_v10 = vld [vmem:[%s2228_s5 + $0x10] sm:$0xff] }
 0x195   : > { %1409 = vmatmul.msk.f32.gmra.mxu2 %vm497_vm2, %v1550_v56  ;;  %940 = vmatpush.msra.mxu3 %v880_v10 }
 0x196   : > { %1551 = vtanh.f32 %v609_v57 }
 0x197   : > { %941 = vmatpush.msra.mxu3 %v879_v13 }
 0x199   : > { %942 = vmatpush.msra.mxu3 %v878_v17 }
 0x19c   : > { %v1552_v58 = vpop.eup %1551 }
 0x19d   : > { %1410 = vmatmul.msk.f32.gmra.mxu2 %vm497_vm2, %v1552_v58 }
 0x1a8   : > { %v702_v59 = vpop.f32.mrf.mxu2 }
 0x1a9   : > { %v703_v0 = vadd.f32 %v1895_v63, %v702_v59 }
 0x1ab   : > { %1553 = vtanh.f32 %v703_v0 }
 0x1b0   : > { %v705_v60 = vpop.f32.mrf.mxu2 }
 0x1b1   : > { %v706_v2 = vadd.f32 %v1895_v63, %v705_v60  ;;  %v1554_v9 = vpop.eup %1553 }
 0x1b2   : > { %v766_v19 = vsel %vm497_vm2, %v1554_v9, -inf }
 0x1b3   : > { %1555 = vtanh.f32 %v706_v2  ;;  %v767_v28 = vrot.slane %v766_v19, 4 }
 0x1b5   : > { %v768_v34 = vmax.f32 %v766_v19, %v767_v28 }
 0x1b7   : > { %v769_v44 = vrot.slane %v768_v34, 2 }
 0x1b8   : > { %v708_v61 = vpop.f32.mrf.mxu2 }
 0x1b9   : > { %v709_v3 = vadd.f32 %v1895_v63, %v708_v61  ;;  %v1556_v11 = vpop.eup %1555  ;;  %v770_v52 = vmax.f32 %v768_v34, %v769_v44 }
 0x1ba   : > { %v773_v16 = vsel %vm497_vm2, %v1556_v11, -inf }
 0x1bb   : > { %1557 = vtanh.f32 %v709_v3  ;;  %v774_v23 = vrot.slane %v773_v16, 4 }
 0x1bd   : > { %v775_v31 = vmax.f32 %v773_v16, %v774_v23 }
 0x1bf   : > { %v776_v39 = vrot.slane %v775_v31, 2 }
 0x1c0   : > { %v711_v62 = vpop.f32.mrf.mxu2 }
 0x1c1   : > { %v712_v4 = vadd.f32 %v1895_v63, %v711_v62  ;;  %v1558_v12 = vpop.eup %1557  ;;  %v777_v48 = vmax.f32 %v775_v31, %v776_v39 }
 0x1c2   : > { %v780_v18 = vsel %vm497_vm2, %v1558_v12, -inf }
 0x1c3   : > { %1559 = vtanh.f32 %v712_v4  ;;  %v781_v26 = vrot.slane %v780_v18, 4  ;;  %v778_v58 = vrot.slane %v777_v48, 1 }
 0x1c5   : > { %v782_v33 = vmax.f32 %v780_v18, %v781_v26 }
 0x1c7   : > { %v783_v42 = vrot.slane %v782_v33, 2 }
 0x1c8   : > { %v714_v1 = vpop.f32.mrf.mxu2 }
 0x1c9   : > { %v715_v5 = vadd.f32 %v1895_v63, %v714_v1  ;;  %v1560_v14 = vpop.eup %1559  ;;  %v784_v51 = vmax.f32 %v782_v33, %v783_v42  ;;  %v771_v1 = vrot.slane %v770_v52, 1 }
 0x1ca   : > { %v787_v20 = vsel %vm497_vm2, %v1560_v14, -inf }
 0x1cb   : > { %1561 = vtanh.f32 %v715_v5  ;;  %v788_v29 = vrot.slane %v787_v20, 4  ;;  %v785_v61 = vrot.slane %v784_v51, 1  ;;  %v779_v5 = vmax.f32 %v777_v48, %v778_v58 }
 0x1cc   : > { %v772_v10 = vmax.f32 %v770_v52, %v771_v1 }
 0x1cd   : > { %v789_v35 = vmax.f32 %v787_v20, %v788_v29 }
 0x1ce   : > { %v903_v18 = vsel %vm902_vm3, %v779_v5, %v772_v10 }
 0x1cf   : > { %v790_v45 = vrot.slane %v789_v35, 2 }
 0x1d0   : > { %v717_v6 = vpop.f32.mrf.mxu2 }
 0x1d1   : > { %v718_v8 = vadd.f32 %v1895_v63, %v717_v6  ;;  %v1562_v15 = vpop.eup %1561  ;;  %v791_v53 = vmax.f32 %v789_v35, %v790_v45 }
 0x1d2   : > { %v794_v24 = vsel %vm497_vm2, %v1562_v15, -inf }
 0x1d3   : > { %1563 = vtanh.f32 %v718_v8  ;;  %v795_v30 = vrot.slane %v794_v24, 4  ;;  %v792_v2 = vrot.slane %v791_v53, 1  ;;  %v786_v8 = vmax.f32 %v784_v51, %v785_v61 }
 0x1d5   : > { %v796_v36 = vmax.f32 %v794_v24, %v795_v30  ;;  %v793_v11 = vmax.f32 %v791_v53, %v792_v2 }
 0x1d7   : > { %v797_v47 = vrot.slane %v796_v36, 2 }
 0x1d8   : > { %v720_v21 = vpop.f32.mrf.mxu2 }
 0x1d9   : > { %v1564_v22 = vpop.eup %1563  ;;  %v721_v25 = vadd.f32 %v1895_v63, %v720_v21  ;;  %v798_v55 = vmax.f32 %v796_v36, %v797_v47  ;;  %v905_v21 = vsel %vm904_vm4, %v786_v8, %v903_v18 }
 0x1da   : > { %v801_v27 = vsel %vm497_vm2, %v1564_v22, -inf  ;;  %v907_v23 = vsel %vm906_vm5, %v793_v11, %v905_v21 }
 0x1db   : > { %1565 = vtanh.f32 %v721_v25  ;;  %v802_v32 = vrot.slane %v801_v27, 4  ;;  %v799_v4 = vrot.slane %v798_v55, 1 }
 0x1dd   : > { %v803_v40 = vmax.f32 %v801_v27, %v802_v32  ;;  %v800_v14 = vmax.f32 %v798_v55, %v799_v4 }
 0x1df   : > { %v804_v49 = vrot.slane %v803_v40, 2  ;;  %v909_v24 = vsel %vm908_vm6, %v800_v14, %v907_v23 }
 0x1e0   : > { %v723_v37 = vpop.f32.mrf.mxu2 }
 0x1e1   : > { %v1566_v38 = vpop.eup %1565  ;;  %v724_v41 = vadd.f32 %v1895_v63, %v723_v37  ;;  %v805_v59 = vmax.f32 %v803_v40, %v804_v49 }
 0x1e2   : > { %v808_v43 = vsel %vm497_vm2, %v1566_v38, -inf }
 0x1e3   : > { %v809_v46 = vrot.slane %v808_v43, 4  ;;  %1567 = vtanh.f32 %v724_v41  ;;  %v806_v7 = vrot.slane %v805_v59, 1 }
 0x1e5   : > { %v810_v50 = vmax.f32 %v808_v43, %v809_v46  ;;  %v807_v16 = vmax.f32 %v805_v59, %v806_v7 }
 0x1e7   : > { %v811_v54 = vrot.slane %v810_v50, 2  ;;  %v911_v27 = vsel %vm910_vm7, %v807_v16, %v909_v24 }
 0x1e8   : > { %v726_v56 = vpop.f32.mrf.mxu2 }
 0x1e9   : > { %v1568_v57 = vpop.eup %1567  ;;  %v727_v60 = vadd.f32 %v1895_v63, %v726_v56  ;;  %v812_v0 = vmax.f32 %v810_v50, %v811_v54 }
 0x1ea   : > { %v815_v62 = vsel %vm497_vm2, %v1568_v57, -inf }
 0x1eb   : > { %v816_v3 = vrot.slane %v815_v62, 4  ;;  %1569 = vtanh.f32 %v727_v60  ;;  %v813_v9 = vrot.slane %v812_v0, 1 }
 0x1ed   : > { %v817_v6 = vmax.f32 %v815_v62, %v816_v3  ;;  %v814_v20 = vmax.f32 %v812_v0, %v813_v9 }
 0x1ef   : > { %v818_v12 = vrot.slane %v817_v6, 2  ;;  %v913_v28 = vsel %vm912_vm8, %v814_v20, %v911_v27 }
 0x1f0   : > { %v729_v13 = vpop.f32.mrf.mxu2 }
 0x1f1   : > { %v730_v15 = vadd.f32 %v1895_v63, %v729_v13  ;;  %v819_v17 = vmax.f32 %v817_v6, %v818_v12  ;;  %v1570_v19 = vpop.eup %1569 }
 0x1f2   : > { %v822_v25 = vsel %vm497_vm2, %v1570_v19, -inf }
 0x1f3   : > { %1571 = vtanh.f32 %v730_v15  ;;  %v820_v22 = vrot.slane %v819_v17, 1  ;;  %v823_v30 = vrot.slane %v822_v25, 4 }
 0x1f5   : > { %v821_v26 = vmax.f32 %v819_v17, %v820_v22  ;;  %v824_v36 = vmax.f32 %v822_v25, %v823_v30 }
 0x1f7   : > { %v915_v29 = vsel %vm914_vm9, %v821_v26, %v913_v28  ;;  %v825_v39 = vrot.slane %v824_v36, 2 }
 0x1f8   : > { %v732_v31 = vpop.f32.mrf.mxu2  ;;  %1411 = vmatmul.msk.f32.vlgmr.msra.gmra.mxu3 %vm497_vm2, %v915_v29 }
 0x1f9   : > { %v1572_v32 = vpop.eup %1571  ;;  %v733_v33 = vadd.f32 %v1895_v63, %v732_v31  ;;  %v826_v46 = vmax.f32 %v824_v36, %v825_v39 }
 0x1fa   : > { %v829_v34 = vsel %vm497_vm2, %v1572_v32, -inf }
 0x1fb   : > { %v830_v35 = vrot.slane %v829_v34, 4  ;;  %1573 = vtanh.f32 %v733_v33  ;;  %v827_v50 = vrot.slane %v826_v46, 1 }
 0x1fd   : > { %v831_v37 = vmax.f32 %v829_v34, %v830_v35  ;;  %v828_v59 = vmax.f32 %v826_v46, %v827_v50  ;;  %v991_v50 = vld [vmem:[%s2230_s7 + $0x138] sm:$0xff] }
 0x1fe   : > { %1241 = vmatpush.msrb.mxu2 %v991_v50 }
 0x1ff   : > { %v832_v38 = vrot.slane %v831_v37, 2 }
 0x200   : > { %v735_v40 = vpop.f32.mrf.mxu2 }
 0x201   : > { %v1574_v41 = vpop.eup %1573  ;;  %v736_v42 = vadd.f32 %v1895_v63, %v735_v40  ;;  %v833_v43 = vmax.f32 %v831_v37, %v832_v38 }
 0x202   : > { %v836_v44 = vsel %vm497_vm2, %v1574_v41, -inf }
 0x203   : > { %v837_v45 = vrot.slane %v836_v44, 4  ;;  %1575 = vtanh.f32 %v736_v42  ;;  %v834_v48 = vrot.slane %v833_v43, 1 }
 0x205   : > { %v838_v47 = vmax.f32 %v836_v44, %v837_v45  ;;  %v835_v55 = vmax.f32 %v833_v43, %v834_v48  ;;  %v989_v48 = vld [vmem:[%s2230_s7 + $0x128] sm:$0xff] }
 0x206   : > { %1195 = vmatpush.msrb.mxu0 %v989_v48 }
 0x207   : > { %v839_v49 = vrot.slane %v838_v47, 2  ;;  %v916_v62 = vsel %vm902_vm3, %v835_v55, %v828_v59  ;;  %v962_v55 = vld [vmem:[%s2230_s7 + $0x50] sm:$0xff]  ;;  %v952_v59 = vld [vmem:[%s2230_s7] sm:$0xff] }
 0x208   : > { %v738_v51 = vpop.f32.mrf.mxu2 }
 0x209   : > { %v1576_v52 = vpop.eup %1575  ;;  %v840_v53 = vmax.f32 %v838_v47, %v839_v49  ;;  %v739_v54 = vadd.f32 %v1895_v63, %v738_v51  ;;  %v982_v47 = vld [vmem:[%s2230_s7 + $0xf0] sm:$0xff]  ;;  %v972_v51 = vld [vmem:[%s2230_s7 + $0xa0] sm:$0xff] }
 0x20a   : > { %v843_v56 = vsel %vm497_vm2, %v1576_v52, -inf  ;;  %v1966_v49 = vld [vmem:[%s2230_s7 + $0x130] sm:$0xff]  ;;  %1034 = vmatpush.msrb.mxu3 %v982_v47  ;;  %v979_v52 = vld [vmem:[%s2230_s7 + $0xd8] sm:$0xff] }
 0x20b   : > { %v841_v57 = vrot.slane %v840_v53, 1  ;;  %v844_v58 = vrot.slane %v843_v56, 4  ;;  %1577 = vtanh.f32 %v739_v54  ;;  %1218 = vmatpush.msrb.mxu1 %v1966_v49  ;;  %v981_v54 = vld [vmem:[%s2230_s7 + $0xe8] sm:$0xff]  ;;  %1196 = vmatpush.msrb.mxu0 %v979_v52 }
 0x20c   : > { %1035 = vmatpush.msrb.mxu3 %v972_v51  ;;  %1242 = vmatpush.msrb.mxu2 %v981_v54 }
 0x20d   : > { %v842_v60 = vmax.f32 %v840_v53, %v841_v57  ;;  %v845_v61 = vmax.f32 %v843_v56, %v844_v58  ;;  %v1981_v53 = vld [vmem:[%s2230_s7 + $0xe0] sm:$0xff]  ;;  %v969_v56 = vld [vmem:[%s2230_s7 + $0x88] sm:$0xff]  ;;  %v1995_v57 = vld [vmem:[%s2230_s7 + $0x90] sm:$0xff] }
 0x20e   : > { %v971_v58 = vld [vmem:[%s2230_s7 + $0x98] sm:$0xff]  ;;  %1219 = vmatpush.msrb.mxu1 %v1981_v53  ;;  %1036 = vmatpush.msrb.mxu3 %v962_v55 }
 0x20f   : > { %v846_v0 = vrot.slane %v845_v61, 2  ;;  %v917_v1 = vsel %vm904_vm4, %v842_v60, %v916_v62  ;;  %v959_v60 = vld [vmem:[%s2230_s7 + $0x38] sm:$0xff]  ;;  %1197 = vmatpush.msrb.mxu0 %v969_v56  ;;  %v961_v62 = vld [vmem:[%s2230_s7 + $0x48] sm:$0xff]  ;;  %1243 = vmatpush.msrb.mxu2 %v971_v58 }
 0x210   : > { %v741_v2 = vpop.f32.mrf.mxu2  ;;  %1220 = vmatpush.msrb.mxu1 %v1995_v57  ;;  %1037 = vmatpush.msrb.mxu3 %v952_v59 }
 0x211   : > { %v1578_v3 = vpop.eup %1577  ;;  %v847_v4 = vmax.f32 %v845_v61, %v846_v0  ;;  %v742_v5 = vadd.f32 %v1895_v63, %v741_v2  ;;  %v2010_v61 = vld [vmem:[%s2230_s7 + $0x40] sm:$0xff]  ;;  %1198 = vmatpush.msrb.mxu0 %v959_v60  ;;  %1244 = vmatpush.msrb.mxu2 %v961_v62 }
 0x212   : > { %v850_v6 = vsel %vm497_vm2, %v1578_v3, -inf  ;;  %1221 = vmatpush.msrb.mxu1 %v2010_v61  ;;  %v1488_v0 = vld [vmem:[%s2229_s6] ss:$0 sm:$0xff] }
 0x213   : > { %v848_v7 = vrot.slane %v847_v4, 1  ;;  %v851_v8 = vrot.slane %v850_v6, 4  ;;  %1579 = vtanh.f32 %v742_v5  ;;  %v973_v5 = vld [vmem:[%s2230_s7 + $0xa8] sm:$0xff] }
 0x215   : > { %v849_v9 = vmax.f32 %v847_v4, %v848_v7  ;;  %v852_v10 = vmax.f32 %v850_v6, %v851_v8  ;;  %v983_v4 = vld [vmem:[%s2230_s7 + $0xf8] sm:$0xff]  ;;  %v953_v7 = vld [vmem:[%s2230_s7 + $0x8] sm:$0xff]  ;;  %v984_v8 = vld [vmem:[%s2230_s7 + $0x100] sm:$0xff] }
 0x216   : > { %1057 = vmatpush.msra.mxu3 %v983_v4  ;;  %v963_v6 = vld [vmem:[%s2230_s7 + $0x58] sm:$0xff] }
 0x217   : > { %v853_v11 = vrot.slane %v852_v10, 2  ;;  %v918_v12 = vsel %vm906_vm5, %v849_v9, %v917_v1  ;;  %v974_v9 = vld [vmem:[%s2230_s7 + $0xb0] sm:$0xff] }
 0x218   : > { %v744_v13 = vpop.f32.mrf.mxu2  ;;  %1058 = vmatpush.msra.mxu3 %v973_v5 }
 0x219   : > { %v1580_v14 = vpop.eup %1579  ;;  %v854_v15 = vmax.f32 %v852_v10, %v853_v11  ;;  %v745_v16 = vadd.f32 %v1895_v63, %v744_v13  ;;  %v964_v10 = vld [vmem:[%s2230_s7 + $0x60] sm:$0xff]  ;;  %v954_v11 = vld [vmem:[%s2230_s7 + $0x10] sm:$0xff] }
 0x21a   : > { %v857_v17 = vsel %vm497_vm2, %v1580_v14, -inf  ;;  %1059 = vmatpush.msra.mxu3 %v963_v6 }
 0x21b   : > { %v855_v18 = vrot.slane %v854_v15, 1  ;;  %v858_v19 = vrot.slane %v857_v17, 4  ;;  %1581 = vtanh.f32 %v745_v16  ;;  %v975_v16 = vld [vmem:[%s2230_s7 + $0xb8] sm:$0xff] }
 0x21c   : > { %1060 = vmatpush.msra.mxu3 %v953_v7 }
 0x21d   : > { %v859_v20 = vmax.f32 %v857_v17, %v858_v19  ;;  %v856_v21 = vmax.f32 %v854_v15, %v855_v18  ;;  %v985_v15 = vld [vmem:[%s2230_s7 + $0x108] sm:$0xff]  ;;  %v955_v18 = vld [vmem:[%s2230_s7 + $0x18] sm:$0xff]  ;;  %v986_v19 = vld [vmem:[%s2230_s7 + $0x110] sm:$0xff] }
 0x21e   : > { %v965_v17 = vld [vmem:[%s2230_s7 + $0x68] sm:$0xff] }
 0x21f   : > { %v860_v22 = vrot.slane %v859_v20, 2  ;;  %v919_v23 = vsel %vm908_vm6, %v856_v21, %v918_v12  ;;  %v966_v21 = vld [vmem:[%s2230_s7 + $0x70] sm:$0xff] }
 0x220   : > { %v747_v24 = vpop.f32.mrf.mxu2 }
 0x221   : > { %v1582_v25 = vpop.eup %1581  ;;  %v861_v26 = vmax.f32 %v859_v20, %v860_v22  ;;  %v748_v27 = vadd.f32 %v1895_v63, %v747_v24  ;;  %v976_v20 = vld [vmem:[%s2230_s7 + $0xc0] sm:$0xff]  ;;  %v977_v24 = vld [vmem:[%s2230_s7 + $0xc8] sm:$0xff] }
 0x222   : > { %v864_v28 = vsel %vm497_vm2, %v1582_v25, -inf  ;;  %v956_v22 = vld [vmem:[%s2230_s7 + $0x20] sm:$0xff]  ;;  %v967_v25 = vld [vmem:[%s2230_s7 + $0x78] sm:$0xff] }
 0x223   : > { %v865_v29 = vrot.slane %v864_v28, 4  ;;  %1583 = vtanh.f32 %v748_v27  ;;  %v862_v30 = vrot.slane %v861_v26, 1  ;;  %v988_v27 = vld [vmem:[%s2230_s7 + $0x120] sm:$0xff] }
 0x225   : > { %v866_v31 = vmax.f32 %v864_v28, %v865_v29  ;;  %v863_v32 = vmax.f32 %v861_v26, %v862_v30  ;;  %v957_v26 = vld [vmem:[%s2230_s7 + $0x28] sm:$0xff]  ;;  %v2117_v28 = vld [vmem:[%s2231_s8] sm:$0xff]  ;;  %v978_v30 = vld [vmem:[%s2230_s7 + $0xd0] sm:$0xff] }
 0x226   : > { %v2124_v29 = vld [vmem:[%s2231_s8 + $0x8] sm:$0x3]  ;;  %v997_v50 = vperm.slane %v2117_v28, 1  ;;  %v998_v55 = vperm.slane %v2117_v28, 2  ;;  %v999_v60 = vperm.slane %v2117_v28, 3  ;;  %v1001_v7 = vperm.slane %v2117_v28, 5 }
 0x227   : > { %v867_v33 = vrot.slane %v866_v31, 2  ;;  %v920_v34 = vsel %vm910_vm7, %v863_v32, %v919_v23  ;;  %v987_v23 = vld [vmem:[%s2230_s7 + $0x118] sm:$0xff]  ;;  %v968_v32 = vld [vmem:[%s2230_s7 + $0x80] sm:$0xff] }
 0x229   : > { %v1584_v35 = vpop.eup %1583  ;;  %v868_v36 = vmax.f32 %v866_v31, %v867_v33  ;;  %v1003_v31 = vperm.slane %v2117_v28, 7  ;;  %v1004_v33 = vperm.slane %v2124_v29, 0 }
 0x22a   : > { %v871_v37 = vsel %vm497_vm2, %v1584_v35, -inf }
 0x22b   : > { %v872_v38 = vrot.slane %v871_v37, 4  ;;  %v869_v39 = vrot.slane %v868_v36, 1 }
 0x22d   : > { %v873_v40 = vmax.f32 %v871_v37, %v872_v38  ;;  %v870_v41 = vmax.f32 %v868_v36, %v869_v39  ;;  %v996_v39 = vperm.slane %v2117_v28, 0 }
 0x22f   : > { %v874_v42 = vrot.slane %v873_v40, 2  ;;  %v921_v63 = vsel %vm912_vm8, %v870_v41, %v920_v34  ;;  %v958_v34 = vld [vmem:[%s2230_s7 + $0x30] sm:$0xff] }
 0x231   : > { %v875_v43 = vmax.f32 %v873_v40, %v874_v42  ;;  %v1005_v40 = vperm.slane %v2124_v29, 1 }
 0x233   : > { %v876_v44 = vrot.slane %v875_v43, 1 }
 0x235   : > { %v877_v45 = vmax.f32 %v875_v43, %v876_v44 }
 0x237   : > { %v922_v46 = vsel %vm914_vm9, %v877_v45, %v921_v63 }
 0x238   : > { %1412 = vmatmul.msk.f32.gmra.mxu3 %vm497_vm2, %v922_v46 }
 0x27b   : > { %v944_v1 = vpop.f32.mrf.mxu3 }
 0x27c   : > { %v945_v2 = vadd.f32 %v1488_v0, %v944_v1 }
 0x27e   : > { %1585 = vtanh.f32 %v945_v2  ;;  %v1000_v2 = vperm.slane %v2117_v28, 4 }
 0x284   : > { %v2020_v3 = vpop.eup %1585 }
 0x285   : > { %1413 = vmatmul.msk.f32.vlgmr.msrb.gmra.mxu3 %vm497_vm2, %v2020_v3  ;;  %1427 = vmatmul.msk.f32.vlgmr.msrb.gmra.mxu0 %vm497_vm2, %v2020_v3 }
 0x286   : > { %1429 = vmatmul.msk.f32.vlgmr.msrb.gmra.mxu1 %vm497_vm2, %v2020_v3  ;;  %1431 = vmatmul.msk.f32.vlgmr.msrb.gmra.mxu2 %vm497_vm2, %v2020_v3 }
 0x287   : > { %1080 = vmatpush.msrb.mxu3 %v984_v8 }
 0x289   : > { %1081 = vmatpush.msrb.mxu3 %v974_v9 }
 0x28b   : > { %1082 = vmatpush.msrb.mxu3 %v964_v10 }
 0x28d   : > { %1083 = vmatpush.msrb.mxu3 %v954_v11 }
 0x2bb   : > { %v947_v12 = vpop.f32.mrf.mxu3 }
 0x2bc   : > { %v948_v13 = vadd.f32 %v1488_v0, %v947_v12  ;;  %v1002_v12 = vperm.slane %v2117_v28, 6 }
 0x2be   : > { %1587 = vtanh.f32 %v948_v13 }
 0x2c4   : > { %v2054_v14 = vpop.eup %1587 }
 0x2c5   : > { %1414 = vmatmul.msk.f32.gmra.mxu3 %vm497_vm2, %v2054_v14  ;;  %1428 = vmatmul.msk.f32.gmra.mxu0 %vm497_vm2, %v2054_v14 }
 0x2c6   : > { %1432 = vmatmul.msk.f32.gmra.mxu2 %vm497_vm2, %v2054_v14 }
 0x2cd   : > { %1415 = vmatmul.msk.f32.vlgmr.msra.gmra.mxu3 %vm497_vm2, %v2020_v3 }
 0x2ce   : > { %1103 = vmatpush.msra.mxu3 %v985_v15 }
 0x2d0   : > { %1104 = vmatpush.msra.mxu3 %v975_v16 }
 0x2d2   : > { %1105 = vmatpush.msra.mxu3 %v965_v17 }
 0x2d4   : > { %1106 = vmatpush.msra.mxu3 %v955_v18 }
 0x2d5   : > { %1416 = vmatmul.msk.f32.gmra.mxu3 %vm497_vm2, %v2054_v14 }
 0x2dd   : > { %1417 = vmatmul.msk.f32.vlgmr.msrb.gmra.mxu3 %vm497_vm2, %v2020_v3 }
 0x2de   : > { %1126 = vmatpush.msrb.mxu3 %v986_v19 }
 0x2e0   : > { %1127 = vmatpush.msrb.mxu3 %v976_v20 }
 0x2e2   : > { %1128 = vmatpush.msrb.mxu3 %v966_v21 }
 0x2e4   : > { %1129 = vmatpush.msrb.mxu3 %v956_v22 }
 0x2e5   : > { %1418 = vmatmul.msk.f32.gmra.mxu3 %vm497_vm2, %v2054_v14 }
 0x2ed   : > { %1419 = vmatmul.msk.f32.vlgmr.msra.gmra.mxu3 %vm497_vm2, %v2020_v3 }
 0x2ee   : > { %1149 = vmatpush.msra.mxu3 %v987_v23 }
 0x2f0   : > { %1150 = vmatpush.msra.mxu3 %v977_v24 }
 0x2f2   : > { %1151 = vmatpush.msra.mxu3 %v967_v25 }
 0x2f4   : > { %1152 = vmatpush.msra.mxu3 %v957_v26 }
 0x2f5   : > { %1420 = vmatmul.msk.f32.gmra.mxu3 %vm497_vm2, %v2054_v14 }
 0x2fd   : > { %1421 = vmatmul.msk.f32.vlgmr.msrb.gmra.mxu3 %vm497_vm2, %v2020_v3 }
 0x2fe   : > { %1172 = vmatpush.msrb.mxu3 %v988_v27 }
 0x300   : > { %1173 = vmatpush.msrb.mxu3 %v978_v30 }
 0x302   : > { %v1200_v35 = vpop.f32.mrf.mxu0  ;;  %1174 = vmatpush.msrb.mxu3 %v968_v32 }
 0x303   : > { %v1201_v36 = vadd.f32 %v1200_v35, %v1003_v31  ;;  %v1223_v37 = vpop.f32.mrf.mxu1 }
 0x304   : > { %v1224_v38 = vadd.f32 %v1223_v37, %v1004_v33  ;;  %1175 = vmatpush.msrb.mxu3 %v958_v34 }
 0x305   : > { %1259 = vst [vmem:[%s2141_s27 + $0x38] sm:$0xff] %v1201_v36  ;;  %1422 = vmatmul.msk.f32.gmra.mxu3 %vm497_vm2, %v2054_v14 }
 0x306   : > { %1260 = vst [vmem:[%s2141_s27 + $0x40] sm:$0xff] %v1224_v38 }
 0x308   : > { %v1039_v41 = vpop.f32.mrf.mxu3 }
 0x309   : > { %v1040_v42 = vadd.f32 %v1039_v41, %v996_v39  ;;  %v1246_v63 = vpop.f32.mrf.mxu2 }
 0x30a   : > { %v1247_v43 = vadd.f32 %v1246_v63, %v1005_v40 }
 0x30b   : > { %1252 = vst [vmem:[%s2141_s27] sm:$0xff] %v1040_v42 }
 0x30c   : > { %1261 = vst [vmem:[%s2141_s27 + $0x48] sm:$0xff] %v1247_v43 }
 0x30d   : > { %1423 = vmatmul.msk.f32.vlgmr.msra.gmra.mxu3 %vm497_vm2, %v2020_v3 }
 0x30e   : > { %1438 = vmatpush.msra.mxu3 %v1966_v49 }
 0x310   : > { %1439 = vmatpush.msra.mxu3 %v1981_v53 }
 0x312   : > { %1440 = vmatpush.msra.mxu3 %v1995_v57 }
 0x314   : > { %1441 = vmatpush.msra.mxu3 %v2010_v61 }
 0x315   : > { %1424 = vmatmul.msk.f32.gmra.mxu3 %vm497_vm2, %v2054_v14 }
 0x31d   : > { %1425 = vmatmul.msk.f32.vlgmr.msrb.gmra.mxu3 %vm497_vm2, %v2020_v3 }
 0x325   : > { %1426 = vmatmul.msk.f32.gmra.mxu3 %vm497_vm2, %v2054_v14 }
 0x32d   : > { %1430 = vmatmul.msk.f32.vlgmr.msra.gmra.mxu3 %vm497_vm2, %v2054_v14 }
 0x342   : > { %v1203_v44 = vpop.f32.mrf.mxu0 }
 0x343   : > { %v1204_v45 = vadd.f32 %v1203_v44, %v1003_v31 }
 0x345   : > { %1269 = vst [vmem:[%s2141_s27 + $0x88] sm:$0xff] %v1204_v45 }
 0x348   : > { %v1042_v46 = vpop.f32.mrf.mxu3 }
 0x349   : > { %v1043_v47 = vadd.f32 %v1042_v46, %v996_v39  ;;  %v1249_v48 = vpop.f32.mrf.mxu2 }
 0x34a   : > { %v1250_v49 = vadd.f32 %v1249_v48, %v1005_v40 }
 0x34b   : > { %1262 = vst [vmem:[%s2141_s27 + $0x50] sm:$0xff] %v1043_v47 }
 0x34c   : > { %1271 = vst [vmem:[%s2141_s27 + $0x98] sm:$0xff] %v1250_v49 }
 0x350   : > { %v1062_v51 = vpop.f32.mrf.mxu3 }
 0x351   : > { %v1063_v52 = vadd.f32 %v1062_v51, %v997_v50 }
 0x353   : > { %1253 = vst [vmem:[%s2141_s27 + $0x8] sm:$0xff] %v1063_v52 }
 0x358   : > { %v1065_v53 = vpop.f32.mrf.mxu3 }
 0x359   : > { %v1066_v54 = vadd.f32 %v1065_v53, %v997_v50 }
 0x35b   : > { %1263 = vst [vmem:[%s2141_s27 + $0x58] sm:$0xff] %v1066_v54 }
 0x360   : > { %v1085_v56 = vpop.f32.mrf.mxu3 }
 0x361   : > { %v1086_v57 = vadd.f32 %v1085_v56, %v998_v55 }
 0x363   : > { %1254 = vst [vmem:[%s2141_s27 + $0x10] sm:$0xff] %v1086_v57 }
 0x368   : > { %v1088_v58 = vpop.f32.mrf.mxu3 }
 0x369   : > { %v1089_v59 = vadd.f32 %v1088_v58, %v998_v55 }
 0x36b   : > { %1264 = vst [vmem:[%s2141_s27 + $0x60] sm:$0xff] %v1089_v59 }
 0x370   : > { %v1108_v61 = vpop.f32.mrf.mxu3 }
 0x371   : > { %v1109_v62 = vadd.f32 %v1108_v61, %v999_v60 }
 0x373   : > { %1255 = vst [vmem:[%s2141_s27 + $0x18] sm:$0xff] %v1109_v62 }
 0x378   : > { %v1111_v0 = vpop.f32.mrf.mxu3 }
 0x379   : > { %v1112_v1 = vadd.f32 %v1111_v0, %v999_v60 }
 0x37b   : > { %1265 = vst [vmem:[%s2141_s27 + $0x68] sm:$0xff] %v1112_v1 }
 0x380   : > { %v1131_v3 = vpop.f32.mrf.mxu3 }
 0x381   : > { %v1132_v4 = vadd.f32 %v1131_v3, %v1000_v2 }
 0x383   : > { %1256 = vst [vmem:[%s2141_s27 + $0x20] sm:$0xff] %v1132_v4 }
 0x388   : > { %v1134_v5 = vpop.f32.mrf.mxu3 }
 0x389   : > { %v1135_v6 = vadd.f32 %v1134_v5, %v1000_v2 }
 0x38b   : > { %1266 = vst [vmem:[%s2141_s27 + $0x70] sm:$0xff] %v1135_v6 }
 0x390   : > { %v1154_v8 = vpop.f32.mrf.mxu3 }
 0x391   : > { %v1155_v9 = vadd.f32 %v1154_v8, %v1001_v7 }
 0x393   : > { %1257 = vst [vmem:[%s2141_s27 + $0x28] sm:$0xff] %v1155_v9 }
 0x398   : > { %v1157_v10 = vpop.f32.mrf.mxu3 }
 0x399   : > { %v1158_v11 = vadd.f32 %v1157_v10, %v1001_v7 }
 0x39b   : > { %1267 = vst [vmem:[%s2141_s27 + $0x78] sm:$0xff] %v1158_v11 }
 0x3a0   : > { %v1177_v13 = vpop.f32.mrf.mxu3 }
 0x3a1   : > { %v1178_v14 = vadd.f32 %v1177_v13, %v1002_v12 }
 0x3a3   : > { %1258 = vst [vmem:[%s2141_s27 + $0x30] sm:$0xff] %v1178_v14 }
 0x3a8   : > { %v1180_v15 = vpop.f32.mrf.mxu3 }
 0x3a9   : > { %v1181_v16 = vadd.f32 %v1180_v15, %v1002_v12 }
 0x3ab   : > { %1268 = vst [vmem:[%s2141_s27 + $0x80] sm:$0xff] %v1181_v16 }
 0x3b0   : > { %v1226_v17 = vpop.f32.mrf.mxu3 }
 0x3b1   : > { %v1227_v18 = vadd.f32 %v1226_v17, %v1004_v33 }
 0x3b3   : > { %1270 = vst [vmem:[%s2141_s27 + $0x90] sm:$0xff] %v1227_v18 }
 0x3b4   : > { %1616 = shalt.err (!%p1613_p3)
}
 0x3b5   : > { %s1653_s24 = smov 1280   ;;  %s1654_s27 = smov 80  }
 0x3b6   : > { %1444 = dma.vmem_to_hbm [thread:$0]  (%p1743_p5), %s1287_s17, 2560, %s1289_s21, %s1273_s22, %s1653_s24, %s1653_s24, %s1654_s27  }
 0x3b7 PF: > { %p1450_p4 = scmp.ge.s32.totalorder %s1651_s12, 2  ;;  %s1303_s16 = sand.u32 1, %s1639_s30  }
 0x3b8   : > { %s1304_s25 = scalar_lea.sflag [#allocation3], %s1303_s16 }
 0x3b9   : > { %p1447_p7 = pnand %p1450_p4, %p1747_p6 }
 0x3bb   : > { %p1448_p8 = pneg %p1447_p7 }
 0x3bd   : > { %1634 = dma.done.wait (%p1448_p8), %s1304_s25, 2560  }
 0x3be   : > { %1636 = vsyncadd (%p1448_p8), %s1304_s25, 4294964736  ;;  %p19_p9 = scmp.ge.s32.totalorder %s1730_s15, 6   ;;  %s2235_s30 = smov %s1643_s10 }
 0x3bf   : > { %s2236_s10 = smov %s1647_s11  ;;  %s2237_s11 = smov %s1741_s18 }
 0x3c0   : > { %s2238_s12 = smov %s1730_s15  ;;  %21 = sbr.rel (!%p19_p9) target bundleno = 3 (0x3), region = 93 }
 0x3c5   :  { %1310 = vsyncpa [#allocation3], 1 }
 0x3c6   :  { %1312 = vsyncpa [#allocation3 + $0x1], 1 }

</bundles_post_ra>
